<compile_context>
chip_gen: v7x
topology: tpu7x:2x2x1
jax: 0.10.0
libtpu: 0.0.40
codegen_flags: <defaults>
</compile_context>

<pallas_src>
import functools

import jax
import jax.numpy as jnp
from jax.experimental import pallas as pl
from jax.experimental.pallas import tpu as pltpu


def _round_up(x, m):
    return ((x + m - 1) // m) * m


def _query_tpu():
    """Best-effort hardware query: (VMEM capacity bytes, TensorCores per chip).

    Conservative fallbacks (64 MiB, 1 core) keep every code path valid even if
    the query is unavailable."""
    vmem_cap = None
    n_cores = 1
    try:
        kind = str(getattr(jax.devices()[0], "device_kind", "") or "")
        if "7" in kind:          # v7x family: 2 TensorCores / chip, 64 MiB VMEM
            n_cores = 2
            vmem_cap = 64 * 1024 * 1024
        try:
            info = pltpu.get_tpu_info()
            v = getattr(info, "vmem_capacity_bytes", None)
            if isinstance(v, int) and v > 0:
                vmem_cap = int(v)
        except Exception:
            pass
    except Exception:
        pass
    if vmem_cap is None:
        vmem_cap = 64 * 1024 * 1024   # conservative default
    return vmem_cap, n_cores


_VMEM_CAP_BYTES, _NUM_TENSORCORES = _query_tpu()


def _pick_tiling(rows, cols, block_budget_bytes):
    """Choose (groups_per_step, tile_r, num_row_tiles) within a VMEM block budget."""
    if block_budget_bytes is None:
        big_vmem = _VMEM_CAP_BYTES > 96 * 1024 * 1024
        block_budget_bytes = (8 if big_vmem else 4) * 1024 * 1024
    bytes_per_row = _round_up(cols, 128) * 4        # VMEM-internal lane padding
    rows_pad8 = _round_up(max(rows, 1), 8)
    if 2 * rows_pad8 * bytes_per_row <= block_budget_bytes:
        # Small map: both channels of a batch element in one grid step.
        return 2, rows, 1
    tile_r = max(8, (block_budget_bytes // bytes_per_row) // 8 * 8)
    if tile_r >= rows:
        return 1, rows, 1
    return 1, tile_r, -(-rows // tile_r)


# -----------------------------------------------------------------------------
# Pallas kernel: one (group-block, row-tile) output block per grid step.
# -----------------------------------------------------------------------------
def _dist_maps_kernel(pts_ref, out_ref, *, num_points, groups_per_step, tile_r,
                      cols, norm_radius, spatial_scale, use_disks):
    """pts_ref: SMEM (num_groups*num_points*3,) f32, flat (row, col, order) triplets.
       out_ref: VMEM (groups_per_step, tile_r, cols) block of the final output."""
    gb = pl.program_id(0)          # group-block index
    rt = pl.program_id(1)          # row-tile index

    row0 = (rt * tile_r).astype(jnp.float32)
    # Separable form: only 1-D iotas are materialized, never a full (H,W) grid.
    row_f = jax.lax.broadcasted_iota(jnp.int32, (tile_r, 1), 0).astype(jnp.float32) + row0
    col_f = jax.lax.broadcasted_iota(jnp.int32, (1, cols), 1).astype(jnp.float32)

    scale = jnp.float32(spatial_scale)
    norm_delim = float(norm_radius) * float(spatial_scale)

    for g_local in range(groups_per_step):
        base = (gb * groups_per_step + g_local) * (num_points * 3)
        dmin = None
        # num_points is small & static -> unrolled. Per point the 2-D work is a
        # single broadcast add + min; everything else is scalar / 1-D.
        # TODO(synk): for very large click counts, verify via bundle dump that
        # the per-point min stays vreg-resident; if not, add an inner strip
        # loop so dmin is stored once per output vreg.
        for p in range(num_points):
            off = base + p * 3
            pr = pts_ref[off]          # click row coordinate
            pc = pts_ref[off + 1]      # click col coordinate
            invalid = jnp.maximum(pr, pc) < 0.0
            # Scalar far-away sentinel == reference's per-pixel d=1e6 substitution
            # (saturates tanh to 1.0 / fails the disk threshold identically).
            pr = jnp.where(invalid, jnp.float32(-1.0e6), pr)
            pc = jnp.where(invalid, jnp.float32(-1.0e6), pc)

            dr = row_f - pr * scale                 # (tile_r, 1)
            dc = col_f - pc * scale                 # (1, cols)
            d = dr * dr + dc * dc                   # broadcast -> (tile_r, cols)
            dmin = d if dmin is None else jnp.minimum(dmin, d)

        if use_disks:
            res = (dmin <= jnp.float32(norm_delim * norm_delim))
            out_ref[g_local, :, :] = res.astype(out_ref.dtype)
        else:
            inv_nd2 = jnp.float32(1.0 / (norm_delim * norm_delim))
            out_ref[g_local, :, :] = jnp.tanh(
                2.0 * jnp.sqrt(dmin * inv_nd2)).astype(out_ref.dtype)


@functools.partial(
    jax.jit, static_argnums=(1, 2, 3),
    static_argnames=("norm_radius", "spatial_scale", "use_disks", "out_dtype",
                     "block_budget_bytes"))
def dist_maps_pallas(points, batchsize, rows, cols, *, norm_radius, spatial_scale,
                     use_disks, out_dtype=jnp.float32, block_budget_bytes=None):
    """points: [B, 2*P, 3] float32 -> [B, 2, rows, cols] (default float32).

    Matches DistMaps.get_coord_features (GPU branch) semantics."""
    points = points.astype(jnp.float32)
    B, twoP, _ = points.shape
    assert B == batchsize
    num_points = twoP // 2
    assert num_points >= 1
    num_groups = B * 2

    groups_per_step, tile_r, n_row_tiles = _pick_tiling(rows, cols, block_budget_bytes)
    n_group_blocks = num_groups // groups_per_step

    # Flat 1-D SMEM click table: group g owns entries [g*P*3, (g+1)*P*3).
    pts_flat = points.reshape(-1)

    kernel = functools.partial(
        _dist_maps_kernel,
        num_points=num_points, groups_per_step=groups_per_step, tile_r=tile_r,
        cols=cols, norm_radius=float(norm_radius),
        spatial_scale=float(spatial_scale), use_disks=bool(use_disks))

    # VMEM budget from the actual working set: double-buffered output block plus
    # a few tile-sized intermediates + slack (not a blanket over-reservation).
    block_bytes = groups_per_step * _round_up(tile_r, 8) * _round_up(cols, 128) * 4
    vmem_limit = int(max(16 * 1024 * 1024,
                         min(6 * block_bytes + (2 << 20), (_VMEM_CAP_BYTES * 3) // 4)))

    # Engage both TensorCores on multi-core parts (v7x) via CORE_PARALLEL on an
    # evenly-dividing grid axis; otherwise the standard "parallel" semantics.
    dim_sem = ("parallel", "parallel")
    if _NUM_TENSORCORES > 1 and hasattr(pltpu, "CORE_PARALLEL"):
        if n_row_tiles > 1 and n_row_tiles % _NUM_TENSORCORES == 0:
            dim_sem = (pltpu.ARBITRARY, pltpu.CORE_PARALLEL)
        elif n_group_blocks > 1 and n_group_blocks % _NUM_TENSORCORES == 0:
            dim_sem = (pltpu.CORE_PARALLEL, pltpu.ARBITRARY)

    out = pl.pallas_call(
        kernel,
        out_shape=jax.ShapeDtypeStruct((num_groups, rows, cols), out_dtype),
        grid=(n_group_blocks, n_row_tiles),
        in_specs=[pl.BlockSpec(memory_space=pltpu.MemorySpace.SMEM)],
        out_specs=pl.BlockSpec((groups_per_step, tile_r, cols),
                               lambda gb, rt: (gb, rt, 0)),
        compiler_params=pltpu.CompilerParams(
            dimension_semantics=dim_sem,
            vmem_limit_bytes=vmem_limit),
    )(pts_flat)

    # Leading-dim-only reshape (B*2 -> B, 2): no data movement.
    return out.reshape(B, 2, rows, cols)


# -----------------------------------------------------------------------------
# Pure-JAX reference (verification only; mirrors the PyTorch GPU branch).
# -----------------------------------------------------------------------------
def dist_maps_ref(points, batchsize, rows, cols, *,
                  norm_radius, spatial_scale, use_disks):
    points = points.astype(jnp.float32)
    B, twoP, _ = points.shape
    num_points = twoP // 2
    pts = points.reshape(-1, 3)
    xy = pts[:, :2]
    invalid = jnp.max(xy, axis=1) < 0
    rg = jnp.arange(rows, dtype=jnp.float32)
    cg = jnp.arange(cols, dtype=jnp.float32)
    coord_rows, coord_cols = jnp.meshgrid(rg, cg, indexing="ij")
    grid = jnp.stack([coord_rows, coord_cols], 0)[None]              # [1,2,H,W]
    add_xy = (xy * spatial_scale)[:, :, None, None]                  # [N,2,1,1]
    coords = grid - add_xy
    if not use_disks:
        coords = coords / (norm_radius * spatial_scale)
    coords = coords * coords
    d = coords[:, 0] + coords[:, 1]                                  # [N,H,W]
    d = jnp.where(invalid[:, None, None], 1.0e6, d)
    d = d.reshape(-1, num_points, rows, cols).min(axis=1)            # [B*2,H,W]
    d = d.reshape(B, 2, rows, cols)
    if use_disks:
        return (d <= (norm_radius * spatial_scale) ** 2).astype(jnp.float32)
    return jnp.tanh(2.0 * jnp.sqrt(d))


# -----------------------------------------------------------------------------
# DistMapsForSampling wrapper (state handling mirrors the PyTorch module).
# All per-click bookkeeping stays traced (no host syncs on device values).
# -----------------------------------------------------------------------------
class DistMapsForSamplingPallas:
    def __init__(self, norm_radius, spatial_scale=1.0, use_disks=False):
        self.norm_radius = norm_radius
        self.spatial_scale = spatial_scale
        self.use_disks = use_disks

    def get_coord_features(self, points, batchsize, rows, cols):
        return dist_maps_pallas(points, batchsize, rows, cols,
                                norm_radius=self.norm_radius,
                                spatial_scale=self.spatial_scale,
                                use_disks=self.use_disks)

    def register(self, x, coords_in):
        coords = coords_in[:1].astype(jnp.float32)            # [1, N, 3]
        self.x = x
        self.points = coords
        idx = jnp.argmax(coords[0, :, 2])                     # traced (batch = 1)
        self.last_click_idx = idx
        last_xy = coords[0, idx, :2]
        self.last_click = jnp.stack([last_xy[1], last_xy[0]]).astype(jnp.float32)
        self.last_number = coords[0, idx, 2]
        coords = coords.at[0, idx].set(jnp.array([-1.0, -1.0, -1.0], jnp.float32))
        self.coords_output = self.get_coord_features(coords, 1, x.shape[2], x.shape[3])

    def get_coord_features_new(self, batchsize, rows, cols, last_click=None):
        if last_click is not None:
            x, y = last_click
        else:
            x, y = self.last_click[0], self.last_click[1]
        p0 = jnp.stack([jnp.asarray(x, jnp.float32),
                        jnp.asarray(y, jnp.float32),
                        jnp.float32(0.0)])
        p1 = jnp.array([-1.0, -1.0, -1.0], jnp.float32)
        points = jnp.stack([p0, p1])[None]                    # [1, 2, 3]
        img_rendered = self.get_coord_features(points, 1, rows, cols)[0, 0]
        img_opposite = jnp.zeros_like(img_rendered)
        is_neg = self.last_click_idx >= (self.points.shape[1] // 2)   # traced bool
        pos_order = jnp.stack([img_rendered, img_opposite])[None]
        neg_order = jnp.stack([img_opposite, img_rendered])[None]
        coords_new = jnp.where(is_neg, neg_order, pos_order)
        coords_output = jnp.clip(self.coords_output + coords_new, 0.0, 1.0)
        return coords_output, coords_new

    def forward(self):
        return self.get_coord_features_new(self.x.shape[0], self.x.shape[2], self.x.shape[3])

    def forward_with_last_click(self, last_click):
        return self.get_coord_features_new(self.x.shape[0], self.x.shape[2],
                                           self.x.shape[3], last_click)


# -----------------------------------------------------------------------------
if __name__ == "__main__":
    key = jax.random.PRNGKey(0)
    kx, kr, kc = jax.random.split(key, 3)

    B, C, H, W = 1, 4, 16, 16
    x = jax.random.normal(kx, (B, C, H, W), dtype=jnp.float32)

    # coords: [1, 4, 3] -> 2 positive clicks then 2 negative slots, each (row, col, order)
    coords_in = jnp.array([[[3.0, 5.0, 1.0],
                            [10.0, 12.0, 2.0],
                            [7.0, 2.0, 0.0],
                            [-1.0, -1.0, -1.0]]], dtype=jnp.float32)

    model = DistMapsForSamplingPallas(norm_radius=5.0, spatial_scale=1.0, use_disks=False)
    model.register(x, coords_in)
    coords_output, coords_new = model.forward()
    jax.block_until_ready((coords_output, coords_new))

    # 1) Small-map folded path (both channels per step), tanh mode.
    got = dist_maps_pallas(coords_in, B, H, W,
                           norm_radius=5.0, spatial_scale=1.0, use_disks=False)
    want = dist_maps_ref(coords_in, B, H, W,
                         norm_radius=5.0, spatial_scale=1.0, use_disks=False)
    assert got.shape == (B, 2, H, W)
    assert jnp.allclose(got, want, atol=1e-5, rtol=1e-5)

    # 2) Batched disk mode on a non-multiple-of-(8,128) map with random clicks.
    B2, P2, R2, C2 = 2, 3, 20, 40
    r2 = jax.random.randint(kr, (B2, 2 * P2, 1), 0, R2).astype(jnp.float32)
    c2 = jax.random.randint(kc, (B2, 2 * P2, 1), 0, C2).astype(jnp.float32)
    o2 = jnp.broadcast_to(jnp.arange(2 * P2, dtype=jnp.float32)[None, :, None],
                          (B2, 2 * P2, 1))
    coords2 = jnp.concatenate([r2, c2, o2], axis=-1)
    coords2 = coords2.at[0, 2].set(jnp.array([-1.0, -1.0, -1.0], jnp.float32))
    coords2 = coords2.at[1, 5].set(jnp.array([-1.0, -1.0, -1.0], jnp.float32))
    got2 = dist_maps_pallas(coords2, B2, R2, C2,
                            norm_radius=3.0, spatial_scale=1.0, use_disks=True)
    want2 = dist_maps_ref(coords2, B2, R2, C2,
                          norm_radius=3.0, spatial_scale=1.0, use_disks=True)
    assert got2.shape == (B2, 2, R2, C2)
    assert jnp.allclose(got2, want2, atol=1e-5, rtol=1e-5)

    # 3) Force the row-tiled (large-map) path, incl. a partial last row tile.
    got3 = dist_maps_pallas(coords_in, 1, 44, 160,
                            norm_radius=5.0, spatial_scale=1.0, use_disks=False,
                            block_budget_bytes=32 * 1024)
    want3 = dist_maps_ref(coords_in, 1, 44, 160,
                          norm_radius=5.0, spatial_scale=1.0, use_disks=False)
    assert jnp.allclose(got3, want3, atol=1e-5, rtol=1e-5)

    assert coords_output.shape == (1, 2, H, W) and coords_new.shape == (1, 2, H, W)
    assert bool(jnp.all(coords_output <= 1.0)) and bool(jnp.all(coords_output >= 0.0))

    print("KERNEL_OK")
</pallas_src>

<mosaic_0001>
module attributes {stable_mosaic.version = 11 : i64} {
  func.func @_dist_maps_kernel(%arg0: i32, %arg1: i32, %arg2: memref<12xf32, #tpu.memory_space<smem>>, %arg3: memref<2x16x16xf32, #tpu.memory_space<vmem>>) attributes {dimension_semantics = [#tpu.dimension_semantics<parallel>, #tpu.dimension_semantics<parallel>], iteration_bounds = array<i64: 1, 1>, scalar_prefetch = 0 : i64, scratch_operands = 0 : i64, tpu.core_type = #tpu.core_type<tc>, window_params = [{transform_indices = @transform_0, window_bounds = array<i64: 12>}, {transform_indices = @transform_1, window_bounds = array<i64: 2, 16, 16>}]} {
    %c16_i32 = arith.constant 16 : i32
    %0 = arith.muli %arg1, %c16_i32 : i32
    %1 = arith.sitofp %0 : i32 to f32
    %2 = tpu.iota {dimensions = array<i32: 0>} : vector<16x1xi32>
    %3 = arith.sitofp %2 : vector<16x1xi32> to vector<16x1xf32>
    %4 = vector.broadcast %1 : f32 to vector<16x1xf32>
    %5 = arith.addf %3, %4 : vector<16x1xf32>
    %6 = tpu.iota {dimensions = array<i32: 1>} : vector<1x16xi32>
    %7 = arith.sitofp %6 : vector<1x16xi32> to vector<1x16xf32>
    %c2_i32 = arith.constant 2 : i32
    %8 = arith.muli %arg0, %c2_i32 : i32
    %c0_i32 = arith.constant 0 : i32
    %9 = arith.addi %8, %c0_i32 : i32
    %c6_i32 = arith.constant 6 : i32
    %10 = arith.muli %9, %c6_i32 : i32
    %c0_i32_0 = arith.constant 0 : i32
    %11 = arith.addi %10, %c0_i32_0 : i32
    %12 = arith.index_cast %11 : i32 to index
    %13 = memref.load %arg2[%12] : memref<12xf32, #tpu.memory_space<smem>>
    %c1_i32 = arith.constant 1 : i32
    %14 = arith.addi %11, %c1_i32 : i32
    %15 = arith.index_cast %14 : i32 to index
    %16 = memref.load %arg2[%15] : memref<12xf32, #tpu.memory_space<smem>>
    %17 = arith.maximumf %13, %16 : f32
    %cst = arith.constant 0.000000e+00 : f32
    %18 = arith.cmpf olt, %17, %cst : f32
    %cst_1 = arith.constant -1.000000e+06 : f32
    %19 = arith.select %18, %cst_1, %13 : f32
    %cst_2 = arith.constant -1.000000e+06 : f32
    %20 = arith.select %18, %cst_2, %16 : f32
    %cst_3 = arith.constant 1.000000e+00 : f32
    %21 = arith.mulf %19, %cst_3 : f32
    %22 = vector.broadcast %21 : f32 to vector<16x1xf32>
    %23 = arith.subf %5, %22 : vector<16x1xf32>
    %cst_4 = arith.constant 1.000000e+00 : f32
    %24 = arith.mulf %20, %cst_4 : f32
    %25 = vector.broadcast %24 : f32 to vector<1x16xf32>
    %26 = arith.subf %7, %25 : vector<1x16xf32>
    %27 = arith.mulf %23, %23 : vector<16x1xf32>
    %28 = arith.mulf %26, %26 : vector<1x16xf32>
    %29 = vector.broadcast %27 : vector<16x1xf32> to vector<16x16xf32>
    %30 = vector.broadcast %28 : vector<1x16xf32> to vector<16x16xf32>
    %31 = arith.addf %29, %30 : vector<16x16xf32>
    %c3_i32 = arith.constant 3 : i32
    %32 = arith.addi %10, %c3_i32 : i32
    %33 = arith.index_cast %32 : i32 to index
    %34 = memref.load %arg2[%33] : memref<12xf32, #tpu.memory_space<smem>>
    %c1_i32_5 = arith.constant 1 : i32
    %35 = arith.addi %32, %c1_i32_5 : i32
    %36 = arith.index_cast %35 : i32 to index
    %37 = memref.load %arg2[%36] : memref<12xf32, #tpu.memory_space<smem>>
    %38 = arith.maximumf %34, %37 : f32
    %cst_6 = arith.constant 0.000000e+00 : f32
    %39 = arith.cmpf olt, %38, %cst_6 : f32
    %cst_7 = arith.constant -1.000000e+06 : f32
    %40 = arith.select %39, %cst_7, %34 : f32
    %cst_8 = arith.constant -1.000000e+06 : f32
    %41 = arith.select %39, %cst_8, %37 : f32
    %cst_9 = arith.constant 1.000000e+00 : f32
    %42 = arith.mulf %40, %cst_9 : f32
    %43 = vector.broadcast %42 : f32 to vector<16x1xf32>
    %44 = arith.subf %5, %43 : vector<16x1xf32>
    %cst_10 = arith.constant 1.000000e+00 : f32
    %45 = arith.mulf %41, %cst_10 : f32
    %46 = vector.broadcast %45 : f32 to vector<1x16xf32>
    %47 = arith.subf %7, %46 : vector<1x16xf32>
    %48 = arith.mulf %44, %44 : vector<16x1xf32>
    %49 = arith.mulf %47, %47 : vector<1x16xf32>
    %50 = vector.broadcast %48 : vector<16x1xf32> to vector<16x16xf32>
    %51 = vector.broadcast %49 : vector<1x16xf32> to vector<16x16xf32>
    %52 = arith.addf %50, %51 : vector<16x16xf32>
    %53 = arith.minimumf %31, %52 : vector<16x16xf32>
    %cst_11 = arith.constant 4.000000e-02 : f32
    %54 = vector.broadcast %cst_11 : f32 to vector<16x16xf32>
    %55 = arith.mulf %53, %54 : vector<16x16xf32>
    %56 = math.sqrt %55 : vector<16x16xf32>
    %cst_12 = arith.constant 2.000000e+00 : f32
    %57 = vector.broadcast %cst_12 : f32 to vector<16x16xf32>
    %58 = arith.mulf %57, %56 : vector<16x16xf32>
    %59 = math.tanh %58 : vector<16x16xf32>
    %c0 = arith.constant 0 : index
    %c0_13 = arith.constant 0 : index
    %c0_14 = arith.constant 0 : index
    %60 = vector.load %arg3[%c0, %c0_13, %c0_14] : memref<2x16x16xf32, #tpu.memory_space<vmem>>, vector<1x16x16xf32>
    %61 = vector.shape_cast %60 : vector<1x16x16xf32> to vector<16x16xf32>
    %62 = vector.shape_cast %59 : vector<16x16xf32> to vector<1x16x16xf32>
    tpu.vector_store %arg3[%c0, %c0_13, %c0_14], %62 {strides = array<i32>} : memref<2x16x16xf32, #tpu.memory_space<vmem>>, vector<1x16x16xf32>,
    %c2_i32_15 = arith.constant 2 : i32
    %63 = arith.muli %arg0, %c2_i32_15 : i32
    %c1_i32_16 = arith.constant 1 : i32
    %64 = arith.addi %63, %c1_i32_16 : i32
    %c6_i32_17 = arith.constant 6 : i32
    %65 = arith.muli %64, %c6_i32_17 : i32
    %c0_i32_18 = arith.constant 0 : i32
    %66 = arith.addi %65, %c0_i32_18 : i32
    %67 = arith.index_cast %66 : i32 to index
    %68 = memref.load %arg2[%67] : memref<12xf32, #tpu.memory_space<smem>>
    %c1_i32_19 = arith.constant 1 : i32
    %69 = arith.addi %66, %c1_i32_19 : i32
    %70 = arith.index_cast %69 : i32 to index
    %71 = memref.load %arg2[%70] : memref<12xf32, #tpu.memory_space<smem>>
    %72 = arith.maximumf %68, %71 : f32
    %cst_20 = arith.constant 0.000000e+00 : f32
    %73 = arith.cmpf olt, %72, %cst_20 : f32
    %cst_21 = arith.constant -1.000000e+06 : f32
    %74 = arith.select %73, %cst_21, %68 : f32
    %cst_22 = arith.constant -1.000000e+06 : f32
    %75 = arith.select %73, %cst_22, %71 : f32
    %cst_23 = arith.constant 1.000000e+00 : f32
    %76 = arith.mulf %74, %cst_23 : f32
    %77 = vector.broadcast %76 : f32 to vector<16x1xf32>
    %78 = arith.subf %5, %77 : vector<16x1xf32>
    %cst_24 = arith.constant 1.000000e+00 : f32
    %79 = arith.mulf %75, %cst_24 : f32
    %80 = vector.broadcast %79 : f32 to vector<1x16xf32>
    %81 = arith.subf %7, %80 : vector<1x16xf32>
    %82 = arith.mulf %78, %78 : vector<16x1xf32>
    %83 = arith.mulf %81, %81 : vector<1x16xf32>
    %84 = vector.broadcast %82 : vector<16x1xf32> to vector<16x16xf32>
    %85 = vector.broadcast %83 : vector<1x16xf32> to vector<16x16xf32>
    %86 = arith.addf %84, %85 : vector<16x16xf32>
    %c3_i32_25 = arith.constant 3 : i32
    %87 = arith.addi %65, %c3_i32_25 : i32
    %88 = arith.index_cast %87 : i32 to index
    %89 = memref.load %arg2[%88] : memref<12xf32, #tpu.memory_space<smem>>
    %c1_i32_26 = arith.constant 1 : i32
    %90 = arith.addi %87, %c1_i32_26 : i32
    %91 = arith.index_cast %90 : i32 to index
    %92 = memref.load %arg2[%91] : memref<12xf32, #tpu.memory_space<smem>>
    %93 = arith.maximumf %89, %92 : f32
    %cst_27 = arith.constant 0.000000e+00 : f32
    %94 = arith.cmpf olt, %93, %cst_27 : f32
    %cst_28 = arith.constant -1.000000e+06 : f32
    %95 = arith.select %94, %cst_28, %89 : f32
    %cst_29 = arith.constant -1.000000e+06 : f32
    %96 = arith.select %94, %cst_29, %92 : f32
    %cst_30 = arith.constant 1.000000e+00 : f32
    %97 = arith.mulf %95, %cst_30 : f32
    %98 = vector.broadcast %97 : f32 to vector<16x1xf32>
    %99 = arith.subf %5, %98 : vector<16x1xf32>
    %cst_31 = arith.constant 1.000000e+00 : f32
    %100 = arith.mulf %96, %cst_31 : f32
    %101 = vector.broadcast %100 : f32 to vector<1x16xf32>
    %102 = arith.subf %7, %101 : vector<1x16xf32>
    %103 = arith.mulf %99, %99 : vector<16x1xf32>
    %104 = arith.mulf %102, %102 : vector<1x16xf32>
    %105 = vector.broadcast %103 : vector<16x1xf32> to vector<16x16xf32>
    %106 = vector.broadcast %104 : vector<1x16xf32> to vector<16x16xf32>
    %107 = arith.addf %105, %106 : vector<16x16xf32>
    %108 = arith.minimumf %86, %107 : vector<16x16xf32>
    %cst_32 = arith.constant 4.000000e-02 : f32
    %109 = vector.broadcast %cst_32 : f32 to vector<16x16xf32>
    %110 = arith.mulf %108, %109 : vector<16x16xf32>
    %111 = math.sqrt %110 : vector<16x16xf32>
    %cst_33 = arith.constant 2.000000e+00 : f32
    %112 = vector.broadcast %cst_33 : f32 to vector<16x16xf32>
    %113 = arith.mulf %112, %111 : vector<16x16xf32>
    %114 = math.tanh %113 : vector<16x16xf32>
    %c1 = arith.constant 1 : index
    %c0_34 = arith.constant 0 : index
    %c0_35 = arith.constant 0 : index
    %115 = vector.load %arg3[%c1, %c0_34, %c0_35] : memref<2x16x16xf32, #tpu.memory_space<vmem>>, vector<1x16x16xf32>
    %116 = vector.shape_cast %115 : vector<1x16x16xf32> to vector<16x16xf32>
    %117 = vector.shape_cast %114 : vector<16x16xf32> to vector<1x16x16xf32>
    tpu.vector_store %arg3[%c1, %c0_34, %c0_35], %117 {strides = array<i32>} : memref<2x16x16xf32, #tpu.memory_space<vmem>>, vector<1x16x16xf32>,
    return
  }
  func.func @transform_0(%arg0: i32, %arg1: i32) -> i32 {
    %c0_i32 = arith.constant 0 : i32
    %c0_i32_0 = arith.constant 0 : i32
    return %c0_i32 : i32
  }
  func.func @transform_1(%arg0: i32, %arg1: i32) -> (i32, i32, i32) {
    %c0_i32 = arith.constant 0 : i32
    %c0_i32_0 = arith.constant 0 : i32
    return %arg0, %arg1, %c0_i32 : i32, i32, i32
  }
}

</mosaic_0001>

<bundles_post_ra>
// kernel: dist_maps_pallas.1
= control target key start
LH: loop header
LB: loop body
LE: loop exit
PB: predicated region body
PF: predicated region fallthrough
CT: control target
= control target key end

     0   :  { %6 = vsyncpa [#allocation4], 0  ;;  %s314_s0 = inlined_call_operand.vmem [shape: f32[12], index: 0, kind: input, shape index: {}]   ;;  %s315_s1 = inlined_call_operand.hbm [shape: f32[2,16,16], index: 1, kind: output, shape index: {}]  }
   0x1   :  { %7 = vsyncpa [#allocation3], 0  ;;  %s14_s8 = sshll.u32 %s314_s0, 4  ;;  %s15_s8 = int_to_ptr.vmem [resolvable:$true] %s14_s8 }
   0x2   :  { %s203_s9 = scalar_lea.vmem %s15_s8, 16  ;;  %p208_p1 = scmp.lt.s32.totalorder %s15_s8, %s15_s8 }
   0x3   :  { %p204_p0 = scmp.ne.s32.totalorder %s15_s8, %s203_s9  ;;  %p209_p2 = scmp.lt.s32.totalorder %s203_s9, %s203_s9 }
   0x5   :  { %p210_p3 = por %p209_p2, %p208_p1 }
   0x7   :  { %p211_p4 = pnand %p210_p3, %p204_p0 }
   0x9   :  { %214 = shalt.err (!%p211_p4)
}
   0xa   :  { %s241_s10 = smov [#allocation2]  }
   0xb   :  { %17 = dma.vmem_to_smem %s15_s8, 16, %s241_s10, [#allocation4]  }
   0xc   :  { %237 = dma.done.wait [#allocation4], 16  }
   0xd   :  { %238 = vsyncadd [#allocation4], 4294967280 }
   0xe   :  { %21 = sfence }
   0xf   :  { %v24_v0 = vlaneseq  ;;  %s36_s11 = sld [smem:[#allocation2]]  ;;  %s176_s12 = sld [smem:[#allocation2 + $0x1]]  ;;  %vm93_vm8 = vcmask 130048  }
  0x10   :  { %s177_s13 = sld [smem:[#allocation2 + $0x3]]  ;;  %s258_s14 = sld [smem:[#allocation2 + $0x4]] }
  0x11   :  { %v25_v1 = vshrl.u32 %v24_v0, 7  ;;  %s260_s0 = sld [smem:[#allocation2 + $0x6]]  ;;  %s262_s15 = sld [smem:[#allocation2 + $0x7]]  ;;  %v33_v3 = vand.u32 127, %v24_v0 }
  0x12   :  { %s264_s16 = sld [smem:[#allocation2 + $0x9]]  ;;  %s266_s17 = sld [smem:[#allocation2 + $0xa]] }
  0x13   :  { %v26_v2 = vadd.s32 8, %v25_v1  ;;  %v27_v4 = vcvt.s32.f32 %v25_v1  ;;  %v34_v6 = vcvt.s32.f32 %v33_v3  ;;  %s242_s25 = smov [#allocation5]  }
  0x14   :  { %s164_s26 = sshll.u32 %s242_s25, 4  ;;  %s165_s26 = int_to_ptr.vmem [resolvable:$true] %s164_s26 }
  0x15   :  { %s39_s18 = smax.f32 %s176_s12, %s36_s11  ;;  %v28_v5 = vcvt.s32.f32 %v26_v2  ;;  %s215_s27 = scalar_lea.vmem %s165_s26, 512 }
  0x16   :  { %p40_p5 = scmp.lt.f32.partialorder %s39_s18, 0.0  ;;  %s57_s19 = smax.f32 %s258_s14, %s177_s13 }
  0x17   :  { %p269_p6 = scmp.lt.f32.partialorder %s57_s19, 0.0  ;;  %s102_s21 = smax.f32 %s262_s15, %s260_s0 }
  0x18   :  { %s320_s11 = smov (%p40_p5, %s36_s11), -1000000.0  ;;  %s322_s12 = smov (%p40_p5, %s176_s12), -1000000.0 }
  0x19   :  { %v43_v7 = vstv %s320_s11  ;;  %s324_s13 = smov (%p269_p6, %s177_s13), -1000000.0  ;;  %v46_v9 = vstv %s322_s12  ;;  %s326_s14 = smov (%p269_p6, %s258_s14), -1000000.0 }
  0x1a   :  { %v44_v8 = vsub.f32 %v27_v4, %v43_v7  ;;  %v45_v10 = vsub.f32 %v28_v5, %v43_v7  ;;  %v47_v11 = vsub.f32 %v34_v6, %v46_v9  ;;  %v61_v12 = vstv %s324_s13  ;;  %p280_p7 = scmp.lt.f32.partialorder %s102_s21, 0.0  ;;  %s120_s23 = smax.f32 %s266_s17, %s264_s16 }
  0x1b   :  { %v62_v14 = vsub.f32 %v27_v4, %v61_v12  ;;  %v64_v15 = vstv %s326_s14  ;;  %p286_p8 = scmp.lt.f32.partialorder %s120_s23, 0.0  ;;  %v63_v19 = vsub.f32 %v28_v5, %v61_v12  ;;  %p216_p9 = scmp.ne.s32.totalorder %s165_s26, %s215_s27 }
  0x1c   :  { %v48_v13 = vmul.f32 %v44_v8, %v44_v8  ;;  %v49_v16 = vmul.f32 %v45_v10, %v45_v10  ;;  %v50_v17 = vmul.f32 %v47_v11, %v47_v11  ;;  %v65_v18 = vsub.f32 %v34_v6, %v64_v15  ;;  %s328_s0 = smov (%p280_p7, %s260_s0), -1000000.0  ;;  %s330_s15 = smov (%p280_p7, %s262_s15), -1000000.0 }
  0x1d   :  { %v66_v20 = vmul.f32 %v62_v14, %v62_v14  ;;  %v67_v24 = vmul.f32 %v63_v19, %v63_v19  ;;  %s332_s16 = smov (%p286_p8, %s264_s16), -1000000.0  ;;  %v106_v25 = vstv %s328_s0  ;;  %v109_v26 = vstv %s330_s15  ;;  %s334_s17 = smov (%p286_p8, %s266_s17), -1000000.0 }
  0x1e   :  { %v51_v21 = vadd.f32 %v50_v17, %v48_v13  ;;  %v68_v22 = vmul.f32 %v65_v18, %v65_v18  ;;  %v52_v23 = vadd.f32 %v50_v17, %v49_v16  ;;  %v107_v29 = vsub.f32 %v27_v4, %v106_v25  ;;  %p220_p10 = scmp.lt.s32.totalorder %s165_s26, %s165_s26  ;;  %p221_p11 = scmp.lt.s32.totalorder %s215_s27, %s215_s27 }
  0x1f   :  { %v110_v30 = vsub.f32 %v34_v6, %v109_v26  ;;  %v124_v31 = vstv %s332_s16  ;;  %v127_v32 = vstv %s334_s17  ;;  %v108_v33 = vsub.f32 %v28_v5, %v106_v25 }
  0x20   :  { %v69_v27 = vadd.f32 %v68_v22, %v66_v20  ;;  %v70_v28 = vadd.f32 %v68_v22, %v67_v24  ;;  %v111_v36 = vmul.f32 %v107_v29, %v107_v29  ;;  %v125_v38 = vsub.f32 %v27_v4, %v124_v31  ;;  %p222_p12 = por %p221_p11, %p220_p10 }
  0x21   :  { %v113_v37 = vmul.f32 %v110_v30, %v110_v30  ;;  %v128_v39 = vsub.f32 %v34_v6, %v127_v32  ;;  %v112_v40 = vmul.f32 %v108_v33, %v108_v33  ;;  %v126_v41 = vsub.f32 %v28_v5, %v124_v31 }
  0x22   :  { %v71_v34 = vmin.f32 %v51_v21, %v69_v27  ;;  %v72_v35 = vmin.f32 %v52_v23, %v70_v28  ;;  %v129_v44 = vmul.f32 %v125_v38, %v125_v38  ;;  %p223_p13 = pnand %p222_p12, %p216_p9 }
  0x23   :  { %v131_v45 = vmul.f32 %v128_v39, %v128_v39  ;;  %v130_v46 = vmul.f32 %v126_v41, %v126_v41  ;;  %v114_v47 = vadd.f32 %v113_v37, %v111_v36  ;;  %v115_v48 = vadd.f32 %v113_v37, %v112_v40 }
  0x24   :  { %v73_v42 = vmul.f32 0.04, %v71_v34  ;;  %v74_v43 = vmul.f32 0.04, %v72_v35 }
  0x25   :  { %v132_v49 = vadd.f32 %v131_v45, %v129_v44  ;;  %v133_v50 = vadd.f32 %v131_v45, %v130_v46 }
  0x26   :  { %187 = vrsqrt.f32 %v73_v42  ;;  %vm77_vm0 = vcmp.eq.f32.partialorder %v73_v42, inf  ;;  %v80_v56 = vand.u32 2147483648, %v73_v42  ;;  %vm79_vm1 = vcmp.eq.f32.partialorder %v73_v42, 0.0 }
  0x27   :  { %189 = vrsqrt.f32 %v74_v43  ;;  %v134_v51 = vmin.f32 %v114_v47, %v132_v49  ;;  %v135_v52 = vmin.f32 %v115_v48, %v133_v50  ;;  %vm84_vm2 = vcmp.eq.f32.partialorder %v74_v43, inf }
  0x28   :  { %v87_v59 = vand.u32 2147483648, %v74_v43  ;;  %vm86_vm3 = vcmp.eq.f32.partialorder %v74_v43, 0.0 }
  0x29   :  { %v136_v53 = vmul.f32 0.04, %v134_v51  ;;  %v137_v54 = vmul.f32 0.04, %v135_v52 }
  0x2b   :  { %191 = vrsqrt.f32 %v136_v53  ;;  %vm140_vm4 = vcmp.eq.f32.partialorder %v136_v53, inf  ;;  %v143_v4 = vand.u32 2147483648, %v136_v53  ;;  %vm142_vm5 = vcmp.eq.f32.partialorder %v136_v53, 0.0 }
  0x2c   :  { %193 = vrsqrt.f32 %v137_v54  ;;  %vm147_vm6 = vcmp.eq.f32.partialorder %v137_v54, inf  ;;  %v150_v7 = vand.u32 2147483648, %v137_v54  ;;  %vm149_vm7 = vcmp.eq.f32.partialorder %v137_v54, 0.0 }
  0x30   :  { %v188_v55 = vpop.eup %187 }
  0x31   :  { %v190_v57 = vpop.eup %189  ;;  %v76_v58 = vmul.f32 %v188_v55, %v73_v42 }
  0x32   :  { %v83_v60 = vmul.f32 %v190_v57, %v74_v43 }
  0x33   :  { %v78_v61 = vsel %vm77_vm0, %v73_v42, %v76_v58 }
  0x34   :  { %v81_v62 = vsel %vm79_vm1, %v80_v56, %v78_v61  ;;  %v85_v63 = vsel %vm84_vm2, %v74_v43, %v83_v60 }
  0x35   :  { %v89_v0 = vmul.f32 2.0, %v81_v62  ;;  %v88_v1 = vsel %vm86_vm3, %v87_v59, %v85_v63  ;;  %v192_v3 = vpop.eup %191 }
  0x36   :  { %v90_v2 = vmul.f32 2.0, %v88_v1  ;;  %v194_v5 = vpop.eup %193  ;;  %v139_v6 = vmul.f32 %v192_v3, %v136_v53 }
  0x37   :  { %195 = vtanh.f32 %v89_v0  ;;  %v146_v8 = vmul.f32 %v194_v5, %v137_v54 }
  0x38   :  { %197 = vtanh.f32 %v90_v2  ;;  %v141_v9 = vsel %vm140_vm4, %v136_v53, %v139_v6 }
  0x39   :  { %v144_v10 = vsel %vm142_vm5, %v143_v4, %v141_v9  ;;  %v148_v11 = vsel %vm147_vm6, %v137_v54, %v146_v8 }
  0x3a   :  { %v152_v12 = vmul.f32 2.0, %v144_v10  ;;  %v151_v13 = vsel %vm149_vm7, %v150_v7, %v148_v11 }
  0x3b   :  { %v153_v14 = vmul.f32 2.0, %v151_v13 }
  0x3c   :  { %199 = vtanh.f32 %v152_v12 }
  0x3d   :  { %201 = vtanh.f32 %v153_v14 }
  0x41   :  { %v196_v15 = vpop.eup %195 }
  0x42   :  { %v198_v16 = vpop.eup %197  ;;  %94 = vst.msk [vmem:[#allocation5] sm:$0xff] %vm93_vm8, %v196_v15 }
  0x43   :  { %95 = vst.msk [vmem:[#allocation5 + $0x8] sm:$0xff] %vm93_vm8, %v198_v16 }
  0x46   :  { %v200_v17 = vpop.eup %199 }
  0x47   :  { %v202_v18 = vpop.eup %201  ;;  %157 = vst.msk [vmem:[#allocation5 + $0x10] sm:$0xff] %vm93_vm8, %v200_v17 }
  0x48   :  { %158 = vst.msk [vmem:[#allocation5 + $0x18] sm:$0xff] %vm93_vm8, %v202_v18 }
  0x49   :  { %226 = shalt.err (!%p223_p13)
}
  0x4a   :  { %s227_s30 = scalar_lea.hbm %s315_s1, 512 }
  0x4b   :  { %p228_p0 = scmp.ne.s32.totalorder %s315_s1, %s227_s30  ;;  %p231_p1 = scmp.lt.u32.totalorder %s227_s30, %s315_s1 }
  0x4d   :  { %p233_p2 = pnand %p231_p1, %p228_p0 }
  0x4f   :  { %236 = shalt.err (!%p233_p2)
}
  0x50   :  { %s243_s6 = smov 128   ;;  %s244_s7 = smov 8  }
  0x51   :  { %170 = dma.vmem_to_hbm [thread:$0]  %s165_s26, 512, %s315_s1, [#allocation3], %s243_s6, %s243_s6, %s244_s7  }
  0x52   :  { %239 = dma.done.wait [#allocation3], 512  }
  0x53   :  { %240 = vsyncadd [#allocation3], 4294966784 }
  0x54   :  { %174 = vsyncpa [#allocation3], 1 }
  0x55   :  { %175 = vsyncpa [#allocation4], 1 }

</bundles_post_ra>
